<compile_context>
chip_gen: v5e
topology: v5e:2x2
jax: 0.10.0
libtpu: 0.0.40
codegen_flags: <defaults>
</compile_context>

<pallas_src>
import functools

import jax
import jax.numpy as jnp
from jax.experimental import pallas as pl
from jax.experimental.pallas import tpu as pltpu

BN_EPS = 1e-5
LANE = 128


def _round_up(x, m):
    return (x + m - 1) // m * m


def _vmem_limit_bytes():
    """Generation-aware scoped-VMEM limit (v5e/v6e: 128 MiB phys, v7x: 64 MiB)."""
    cap = 64 * 1024 * 1024  # conservative fallback, valid on every generation
    try:
        info = pltpu.get_tpu_info()
        cap = int(getattr(info, "vmem_capacity_bytes", cap) or cap)
    except Exception:
        pass
    return cap * 7 // 8  # leave headroom for compiler-internal scratch


def _pick_row_tile(n_pad, bytes_per_row=0, budget=None, cap=1024):
    """Largest row tile (<=cap) dividing n_pad; prefer >=2 tiles so both v7x
    TensorCores get row tiles on 'parallel' grids; respect a VMEM byte budget."""
    cands = [c for c in (1024, 512, 256, 128, 64, 32, 16, 8) if c <= min(cap, n_pad)]
    for need_two in (True, False):
        for c in cands:
            if n_pad % c:
                continue
            if need_two and n_pad // c < 2:
                continue
            if budget is not None and c * bytes_per_row > budget:
                continue
            return c
    return 8


# ----------------------------- lins[0] (+optional W'_1 epilogue) -----------------------------
def _lin0_kernel(x_ref, w_ref, b_ref, o_ref):
    h = jnp.maximum(
        jnp.dot(x_ref[...], w_ref[...], preferred_element_type=jnp.float32) + b_ref[...],
        0.0)
    o_ref[...] = h.astype(o_ref.dtype)


def _lin0_fused_kernel(x_ref, w_ref, b_ref, w2_ref, o_ref):
    # relu(x @ W_in + b_in) @ W'_1  -- first GCN layer's feature transform fused
    # into the epilogue so the streamed GCN kernel never recomputes h@W.
    h = jnp.maximum(
        jnp.dot(x_ref[...], w_ref[...], preferred_element_type=jnp.float32) + b_ref[...],
        0.0)
    o_ref[...] = jnp.dot(h.astype(jnp.bfloat16), w2_ref[...],
                         preferred_element_type=jnp.float32).astype(o_ref.dtype)


def _lin0(x, w, b, w_next, tile_m, vmem_limit):
    n_pad, cin = x.shape
    f = w.shape[1]
    fused = w_next is not None
    f2 = w_next.shape[1] if fused else f
    in_specs = [
        pl.BlockSpec((tile_m, cin), lambda i: (i, 0)),   # contraction dim left unpadded
        pl.BlockSpec((cin, f), lambda i: (0, 0)),        # W_in resident
        pl.BlockSpec((1, f), lambda i: (0, 0)),          # b_in resident
    ]
    args = (x, w, b)
    if fused:
        in_specs.append(pl.BlockSpec((f, f2), lambda i: (0, 0)))  # W'_1 resident
        args = args + (w_next,)
    return pl.pallas_call(
        _lin0_fused_kernel if fused else _lin0_kernel,
        out_shape=jax.ShapeDtypeStruct((n_pad, f2), jnp.bfloat16),
        grid=(n_pad // tile_m,),
        in_specs=in_specs,
        out_specs=pl.BlockSpec((tile_m, f2), lambda i: (i, 0)),
        compiler_params=pltpu.CompilerParams(
            dimension_semantics=("parallel",),
            vmem_limit_bytes=vmem_limit,
        ),
    )(*args)


# ------------------ fused all-layers kernel (A_hat VMEM-resident, fetched once) ------------------
def _fused_layers_kernel(a_ref, h0_ref, w_ref, b_ref, wo_ref, bo_ref, o_ref, h_scr):
    l = pl.program_id(0)
    last = pl.num_programs(0) - 1

    @pl.when(l == 0)
    def _():
        h_scr[...] = h0_ref[...]

    # Feature transform once per LAYER (not per row tile); f32 MXU accumulation.
    hw = jnp.dot(h_scr[...], w_ref[0], preferred_element_type=jnp.float32)
    z = jnp.dot(a_ref[...], hw.astype(jnp.bfloat16), preferred_element_type=jnp.float32)
    z = jnp.maximum(z + b_ref[0], 0.0)          # folded eval-BatchNorm bias + ReLU

    @pl.when(l < last)
    def _():
        h_scr[...] = z.astype(h_scr.dtype)

    @pl.when(l == last)
    def _():
        # lins[1] fused into the last layer's epilogue
        o_ref[...] = (jnp.dot(z.astype(jnp.bfloat16), wo_ref[...],
                              preferred_element_type=jnp.float32)
                      + bo_ref[...]).astype(o_ref.dtype)


def _fused_gcn_stack(a, h0, w_stack, b_stack, w_out, b_out, vmem_limit):
    n_pad, f = h0.shape
    num_layers = w_stack.shape[0]
    out_pad = w_out.shape[1]
    return pl.pallas_call(
        _fused_layers_kernel,
        out_shape=jax.ShapeDtypeStruct((n_pad, out_pad), jnp.float32),
        grid=(num_layers,),                       # sequential layer chain (scratch carry)
        in_specs=[
            pl.BlockSpec((n_pad, n_pad), lambda l: (0, 0)),   # A_hat: DMA'd once, resident
            pl.BlockSpec((n_pad, f), lambda l: (0, 0)),       # h0: DMA'd once, read at l==0
            pl.BlockSpec((1, f, f), lambda l: (l, 0, 0)),     # per-layer folded W'
            pl.BlockSpec((1, 1, f), lambda l: (l, 0, 0)),     # per-layer folded b'
            pl.BlockSpec((f, out_pad), lambda l: (0, 0)),     # W_out resident
            pl.BlockSpec((1, out_pad), lambda l: (0, 0)),     # b_out resident
        ],
        out_specs=pl.BlockSpec((n_pad, out_pad), lambda l: (0, 0)),
        scratch_shapes=[pltpu.VMEM((n_pad, f), jnp.bfloat16)],  # h carried across layers
        compiler_params=pltpu.CompilerParams(
            dimension_semantics=("arbitrary",),
            vmem_limit_bytes=vmem_limit,
        ),
    )(a, h0, w_stack, b_stack, w_out, b_out)


# ------------------ streamed fallback: A row slabs streamed, h@W' hoisted to epilogue ------------------
def _gcn_mid_kernel(a_ref, hw_ref, b_ref, w2_ref, o_ref):
    # acc = A_slab @ (h @ W')  (hW precomputed by the previous kernel's epilogue)
    z = jnp.maximum(
        jnp.dot(a_ref[...], hw_ref[...], preferred_element_type=jnp.float32) + b_ref[...],
        0.0)
    # emit next layer's feature transform directly (hides under MXU slack of the
    # HBM-bound A stream); no extra pallas_call / HBM round trip of h.
    o_ref[...] = jnp.dot(z.astype(jnp.bfloat16), w2_ref[...],
                         preferred_element_type=jnp.float32).astype(o_ref.dtype)


def _gcn_last_kernel(a_ref, hw_ref, b_ref, w2_ref, b2_ref, o_ref):
    z = jnp.maximum(
        jnp.dot(a_ref[...], hw_ref[...], preferred_element_type=jnp.float32) + b_ref[...],
        0.0)
    o_ref[...] = (jnp.dot(z.astype(jnp.bfloat16), w2_ref[...],
                          preferred_element_type=jnp.float32)
                  + b2_ref[...]).astype(o_ref.dtype)        # lins[1] fused here


def _gcn_stream(a, hw, b, w2, b2, tile_m, vmem_limit):
    n_pad = a.shape[0]
    f = hw.shape[1]
    f2 = w2.shape[1]
    final = b2 is not None
    in_specs = [
        pl.BlockSpec((tile_m, n_pad), lambda i: (i, 0)),   # stream A_hat row slabs
        pl.BlockSpec((n_pad, f), lambda i: (0, 0)),        # h@W' resident: DMA'd once per layer
        pl.BlockSpec((1, f), lambda i: (0, 0)),            # folded bias resident
        pl.BlockSpec((f, f2), lambda i: (0, 0)),           # next layer's W (or W_out) resident
    ]
    args = (a, hw, b, w2)
    if final:
        in_specs.append(pl.BlockSpec((1, f2), lambda i: (0, 0)))
        args = args + (b2,)
    return pl.pallas_call(
        _gcn_last_kernel if final else _gcn_mid_kernel,
        out_shape=jax.ShapeDtypeStruct((n_pad, f2),
                                       jnp.float32 if final else jnp.bfloat16),
        grid=(n_pad // tile_m,),
        in_specs=in_specs,
        out_specs=pl.BlockSpec((tile_m, f2), lambda i: (i, 0)),
        compiler_params=pltpu.CompilerParams(
            dimension_semantics=("parallel",),        # row tiles -> both v7x TensorCores
            vmem_limit_bytes=vmem_limit,
        ),
    )(*args)
    # TODO(synk): for graphs where even h@W' (N_pad x f) exceeds VMEM, add a
    # k-blocked (i,k) streamed variant with an f32 VMEM accumulator.


# ------------------------------------ wrapper -------------------------------------
def link_predictor_backbone(x, a_hat, params, num_layers, out_channels,
                            force_streamed=False):
    if num_layers < 1:
        raise ValueError("num_layers >= 1 required")  # TODO(synk): pure-MLP (0-layer) path
    n, cin = x.shape
    hidden = params["w_in"].shape[1]

    n_pad = _round_up(n, LANE)
    h_pad = _round_up(hidden, LANE)
    out_pad = _round_up(out_channels, LANE)

    vmem_limit = _vmem_limit_bytes()
    budget = int(vmem_limit * 0.8)

    def pad2(a, r, c):
        return jnp.pad(a, ((0, r - a.shape[0]), (0, c - a.shape[1])))

    # Only node rows of x are padded; the in_channels contraction dim stays unpadded.
    x_p = pad2(x, n_pad, cin).astype(jnp.bfloat16)
    # INVARIANT: A_hat padding rows/cols are ZERO.  Padded node rows of h contain
    # relu(bias) garbage; the zero A columns guarantee they never contribute.
    a_p = pad2(a_hat, n_pad, n_pad).astype(jnp.bfloat16)

    w_in = pad2(params["w_in"], cin, h_pad).astype(jnp.bfloat16)
    b_in = pad2(params["b_in"], 1, h_pad).astype(jnp.float32)
    w_out = pad2(params["w_out"], h_pad, out_pad).astype(jnp.bfloat16)
    b_out = pad2(params["b_out"], 1, out_pad).astype(jnp.float32)

    # Fold eval-mode BatchNorm1d into each GCNConv weight/bias on the host (f32 math):
    #   BN(A@(hW)+b) = A@(h@(W*s)) + (b - mean)*s + beta,  s = gamma*rsqrt(var+eps)
    folded_w, folded_b = [], []
    for l in range(num_layers):
        p = params["layers"][l]
        s = p["gamma"] * jax.lax.rsqrt(p["var"] + BN_EPS)
        folded_w.append(pad2(p["w_conv"] * s, h_pad, h_pad).astype(jnp.bfloat16))
        folded_b.append(pad2((p["b_conv"] - p["mean"]) * s + p["beta"], 1, h_pad)
                        .astype(jnp.float32))
    # TODO(synk): training-mode dropout (stochastic masking via pltpu.prng_*) not implemented.

    # Path selection: fuse all GCN layers into one pallas_call when the whole
    # working set (incl. double buffers) fits the generation's VMEM budget.
    fused_bytes = (2 * n_pad * n_pad * 2                       # A_hat (bf16, 2 bufs)
                   + 3 * n_pad * h_pad * 2                     # h0 (2 bufs) + h scratch
                   + 2 * (h_pad * h_pad * 2 + h_pad * 4)       # per-layer W'/b' blocks
                   + 2 * (h_pad * out_pad * 2 + out_pad * 4)   # W_out / b_out
                   + 2 * n_pad * out_pad * 4)                  # output (f32, 2 bufs)
    use_fused = (not force_streamed) and fused_bytes <= budget

    if use_fused:
        tile_m = _pick_row_tile(n_pad, bytes_per_row=2 * (cin + 3 * h_pad) * 2,
                                budget=budget)
        h0 = _lin0(x_p, w_in, b_in, None, tile_m, vmem_limit)
        out = _fused_gcn_stack(a_p, h0, jnp.stack(folded_w), jnp.stack(folded_b),
                               w_out, b_out, vmem_limit)
    else:
        resident = (2 * n_pad * h_pad * 2                       # resident h@W'
                    + 4 * h_pad * h_pad * 2 + 8 * h_pad * 4)    # resident weights/biases
        per_row = 2 * (n_pad * 2 + max(h_pad, out_pad) * 4 + h_pad * 2)
        tile_m = _pick_row_tile(n_pad, bytes_per_row=per_row,
                                budget=max(budget - resident, per_row * 8))
        # lins[0] + relu with the first layer's W' folded into its epilogue.
        hw = _lin0(x_p, w_in, b_in, folded_w[0], tile_m, vmem_limit)
        for l in range(num_layers):
            if l + 1 < num_layers:
                hw = _gcn_stream(a_p, hw, folded_b[l], folded_w[l + 1], None,
                                 tile_m, vmem_limit)
            else:
                out = _gcn_stream(a_p, hw, folded_b[l], w_out, b_out,
                                  tile_m, vmem_limit)

    out = out[:n, :out_channels]
    thetas = [None] * num_layers  # ReLUActivation produces no theta
    return out, thetas


def build_normalized_adjacency(edge_index, num_nodes):
    """Dense GCN normalization: A_hat = D^-1/2 (A + I) D^-1/2 (matches PyG gcn_norm;
    duplicate edges accumulate like scatter_add, self loops added only where missing)."""
    src, dst = edge_index[0], edge_index[1]
    a = jnp.zeros((num_nodes, num_nodes), jnp.float32)
    a = a.at[dst, src].add(1.0)
    idx = jnp.arange(num_nodes)
    diag = a[idx, idx]
    a = a.at[idx, idx].set(jnp.where(diag > 0, diag, 1.0))   # add_remaining_self_loops
    deg = a.sum(axis=1)
    d = jnp.where(deg > 0, jax.lax.rsqrt(deg), 0.0)
    return d[:, None] * a * d[None, :]


def _reference_forward(x, a_hat, params, num_layers):
    """Pure-JAX f32 reference of the same eval-mode forward (loose bf16 check)."""
    h = jnp.maximum(x @ params["w_in"] + params["b_in"], 0.0)
    for l in range(num_layers):
        p = params["layers"][l]
        h = a_hat @ (h @ p["w_conv"]) + p["b_conv"]
        h = (h - p["mean"]) * jax.lax.rsqrt(p["var"] + BN_EPS) * p["gamma"] + p["beta"]
        h = jnp.maximum(h, 0.0)
    return h @ params["w_out"] + params["b_out"]


if __name__ == "__main__":
    key = jax.random.PRNGKey(0)
    N, E = 64, 128
    in_channels, hidden_channels, out_channels = 16, 32, 8
    num_layers = 2
    # dropout = 0.5 is inactive in eval mode

    keys = jax.random.split(key, 8)
    x = jax.random.normal(keys[0], (N, in_channels), jnp.float32)
    src = jax.random.randint(keys[1], (E,), 0, N)
    dst = jax.random.randint(keys[2], (E,), 0, N)
    # undirected graph (both directions), standard for GCN symmetric normalization;
    # edge_attr is accepted by forward() but unused by GCNConv, so it is omitted.
    edge_index = jnp.stack([jnp.concatenate([src, dst]), jnp.concatenate([dst, src])])

    a_hat = build_normalized_adjacency(edge_index, N)

    def linear_init(k, fan_in, fan_out):
        kw, kb = jax.random.split(k)
        bound = 1.0 / float(fan_in) ** 0.5
        w = jax.random.uniform(kw, (fan_in, fan_out), jnp.float32, -bound, bound)
        b = jax.random.uniform(kb, (1, fan_out), jnp.float32, -bound, bound)
        return w, b

    w_in, b_in = linear_init(keys[4], in_channels, hidden_channels)
    w_out, b_out = linear_init(keys[5], hidden_channels, out_channels)

    layers = []
    for l in range(num_layers):
        kl = jax.random.fold_in(key, 100 + l)
        k1, k2 = jax.random.split(kl)
        bound = (6.0 / (hidden_channels + hidden_channels)) ** 0.5  # glorot
        layers.append(dict(
            w_conv=jax.random.uniform(k1, (hidden_channels, hidden_channels),
                                      jnp.float32, -bound, bound),
            b_conv=jnp.zeros((1, hidden_channels), jnp.float32),
            gamma=jnp.ones((1, hidden_channels), jnp.float32),
            beta=jnp.zeros((1, hidden_channels), jnp.float32),
            mean=0.05 * jax.random.normal(k2, (1, hidden_channels), jnp.float32),
            var=jnp.ones((1, hidden_channels), jnp.float32),
        ))

    params = dict(w_in=w_in, b_in=b_in, w_out=w_out, b_out=b_out, layers=layers)
    ref = _reference_forward(x, a_hat, params, num_layers)

    # Path 1: fused all-layers kernel (A_hat fetched from HBM exactly once).
    out_f, th_f = link_predictor_backbone(x, a_hat, params, num_layers, out_channels)
    out_f = jax.block_until_ready(out_f)
    # Path 2: streamed fallback (row-parallel A slabs, h@W hoisted into epilogues).
    out_s, th_s = link_predictor_backbone(x, a_hat, params, num_layers, out_channels,
                                          force_streamed=True)
    out_s = jax.block_until_ready(out_s)

    for out, th in ((out_f, th_f), (out_s, th_s)):
        assert out.shape == (N, out_channels)
        assert out.dtype == jnp.float32
        assert len(th) == num_layers and all(t is None for t in th)
        max_err = float(jnp.max(jnp.abs(out - ref)))
        assert max_err < 0.1, f"max abs error vs f32 reference too large: {max_err}"
    print("KERNEL_OK")
</pallas_src>

<mosaic_0001>
module attributes {stable_mosaic.version = 11 : i64} {
  func.func @_lin0_kernel(%arg0: i32, %arg1: memref<64x16xbf16, #tpu.memory_space<vmem>>, %arg2: memref<16x128xbf16, #tpu.memory_space<vmem>>, %arg3: memref<1x128xf32, #tpu.memory_space<vmem>>, %arg4: memref<64x128xbf16, #tpu.memory_space<vmem>>) attributes {dimension_semantics = [#tpu.dimension_semantics<parallel>], iteration_bounds = array<i64: 2>, scalar_prefetch = 0 : i64, scratch_operands = 0 : i64, tpu.core_type = #tpu.core_type<tc>, window_params = [{transform_indices = @transform_0, window_bounds = array<i64: 64, 16>}, {pipeline_mode = #tpu.pipeline_mode<synchronous>, transform_indices = @transform_1, window_bounds = array<i64: 16, 128>}, {pipeline_mode = #tpu.pipeline_mode<synchronous>, transform_indices = @transform_2, window_bounds = array<i64: 1, 128>}, {transform_indices = @transform_3, window_bounds = array<i64: 64, 128>}]} {
    %c0 = arith.constant 0 : index
    %c0_0 = arith.constant 0 : index
    %0 = vector.load %arg1[%c0, %c0_0] : memref<64x16xbf16, #tpu.memory_space<vmem>>, vector<64x16xbf16>
    %c0_1 = arith.constant 0 : index
    %c0_2 = arith.constant 0 : index
    %1 = vector.load %arg2[%c0_1, %c0_2] : memref<16x128xbf16, #tpu.memory_space<vmem>>, vector<16x128xbf16>
    %cst = arith.constant dense<0.000000e+00> : vector<64x128xf32>
    %2 = tpu.matmul %0, %1, %cst {dimension_numbers = #tpu.dot_dimension_numbers<[1], [0], [0], [1], [0, 0, 1, 1], [], []>} : vector<64x16xbf16>, vector<16x128xbf16>, vector<64x128xf32> -> vector<64x128xf32>
    %c0_3 = arith.constant 0 : index
    %c0_4 = arith.constant 0 : index
    %3 = vector.load %arg3[%c0_3, %c0_4] : memref<1x128xf32, #tpu.memory_space<vmem>>, vector<1x128xf32>
    %4 = vector.broadcast %3 : vector<1x128xf32> to vector<64x128xf32>
    %5 = arith.addf %2, %4 : vector<64x128xf32>
    %cst_5 = arith.constant 0.000000e+00 : f32
    %6 = vector.broadcast %cst_5 : f32 to vector<64x128xf32>
    %7 = arith.maximumf %5, %6 : vector<64x128xf32>
    %8 = arith.truncf %7 : vector<64x128xf32> to vector<64x128xbf16>
    %c0_6 = arith.constant 0 : index
    %c0_7 = arith.constant 0 : index
    %9 = vector.load %arg4[%c0_6, %c0_7] : memref<64x128xbf16, #tpu.memory_space<vmem>>, vector<64x128xbf16>
    tpu.vector_store %arg4[%c0_6, %c0_7], %8 {strides = array<i32>} : memref<64x128xbf16, #tpu.memory_space<vmem>>, vector<64x128xbf16>,
    return
  }
  func.func @transform_0(%arg0: i32) -> (i32, i32) {
    %c0_i32 = arith.constant 0 : i32
    %c0_i32_0 = arith.constant 0 : i32
    return %arg0, %c0_i32 : i32, i32
  }
  func.func @transform_1(%arg0: i32) -> (i32, i32) {
    %c0_i32 = arith.constant 0 : i32
    %c0_i32_0 = arith.constant 0 : i32
    %c0_i32_1 = arith.constant 0 : i32
    return %c0_i32, %c0_i32_0 : i32, i32
  }
  func.func @transform_2(%arg0: i32) -> (i32, i32) {
    %c0_i32 = arith.constant 0 : i32
    %c0_i32_0 = arith.constant 0 : i32
    %c0_i32_1 = arith.constant 0 : i32
    return %c0_i32, %c0_i32_0 : i32, i32
  }
  func.func @transform_3(%arg0: i32) -> (i32, i32) {
    %c0_i32 = arith.constant 0 : i32
    %c0_i32_0 = arith.constant 0 : i32
    return %arg0, %c0_i32 : i32, i32
  }
}

</mosaic_0001>

<bundles_post_ra>
// kernel: tpu_custom_call.1
= control target key start
LH: loop header
LB: loop body
LE: loop exit
PB: predicated region body
PF: predicated region fallthrough
CT: control target
= control target key end

     0   :  { %8 = vsyncpa [#allocation3], 0  ;;  %s647_s0 = inlined_call_operand.vmem [shape: bf16[128,16], index: 0, kind: input, shape index: {}]   ;;  %s648_s1 = inlined_call_operand.vmem [shape: bf16[16,128], index: 1, kind: input, shape index: {}]   ;;  %s649_s2 = inlined_call_operand.vmem [shape: f32[1,128], index: 2, kind: input, shape index: {}]   ;;  %s650_s3 = inlined_call_operand.hbm [shape: bf16[128,128], index: 3, kind: output, shape index: {}]  }
   0x1   :  { %10 = vsyncpa [#allocation3 + $0x1], 0  ;;  %s553_s12 = smov 0   ;;  %s555_s13 = smov 0  }
   0x2   :  { %s557_s14 = smov 0   ;;  %s559_s15 = smov 0  }
   0x3 LB: > { %s574_s16 = sadd.s32 4294967295, %s529_s15   ;;  %s357_s17 = sadd.s32 4294967294, %s529_s15   ;;  %s529_s15 = sphi %s559_s15, %s656_s15   ;;  %s525_s14 = sphi %s557_s14, %s655_s14   ;;  %s521_s13 = sphi %s555_s13, %s654_s13   ;;  %s517_s12 = sphi %s553_s12, %s653_s12  }
   0x4   : > { %s578_s18 = sadd.s32 1, %s529_s15   ;;  %s91_s19 = sadd.s32 1, %s525_s14 }
   0x5   : > { %s88_s20 = ssub.s32 %s529_s15, %s578_s18  ;;  %p101_p0 = scmp.ne.s32.totalorder %s525_s14, %s521_s13 }
   0x6   : > { %p89_p1 = scmp.eq.s32.totalorder %s88_s20, 0  ;;  %p102_p2 = scmp.eq.s32.totalorder %s574_s16, 1 }
   0x7   : > { %p107_p3 = scmp.ne.s32.totalorder %s521_s13, %s517_s12  ;;  %p108_p4 = scmp.eq.s32.totalorder %s357_s17, 1 }
   0x8   : > { %s589_s21 = scalar_select %p89_p1, %s525_s14, %s91_s19  }
   0x9   : > { %p591_p5 = por %p102_p2, %p101_p0  ;;  %p595_p6 = por %p108_p4, %p107_p3 }
   0xa   : > { %p360_p7 = scmp.ge.s32.totalorder %s529_s15, 1  ;;  %p141_p8 = scmp.lt.s32.totalorder %s529_s15, 3 }
   0xc   : > { %p142_p9 = pnand %p360_p7, %p141_p8 }
   0xd   : > { %s362_s26 = sshll.u32 (!%p142_p9), %s574_s16, 3  ;;  %s162_s6 = sand.u32 (!%p142_p9), 1, %s521_s13  }
   0xe   : > { %145 = sbr.rel (%p142_p9) target bundleno = 175 (0xaf), region = 32  ;;  %p166_p10 = scmp.lt.s32.totalorder (!%p142_p9), %s362_s26, 15 }
   0xf   : > { %s361_s7 = sshll.u32 (!%p142_p9), %s162_s6, 5  ;;  %s398_s8 = sshll.u32 (!%p142_p9), %s574_s16, 5 }
  0x10   : > { %s291_s11 = scalar_lea.hbm (!%p142_p9), %s650_s3, %s398_s8  ;;  %s164_s17 = scalar_lea.vmem (!%p142_p9), [#allocation2], %s361_s7 }
  0x11   : > { %s292_s19 = sshll.u32 (!%p142_p9), %s164_s17, 4  ;;  %s294_s20 = sshll.u32 (!%p142_p9), %s291_s11, 4  ;;  %s293_s19 = int_to_ptr.vmem [resolvable:$true] %s292_s19  ;;  %s295_s20 = int_to_ptr.hbm [resolvable:$true] %s294_s20 }
  0x12   : > { %s280_s16 = scalar_lea.sflag (!%p142_p9), [#allocation3], %s162_s6  ;;  %s481_s24 = sshra.s32 (!%p142_p9), %s295_s20, 4  ;;  %s482_s24 = int_to_ptr.hbm [resolvable:$true] %s481_s24 }
  0x13   : > { %v397_v0 = vld [vmem:[%s648_s1] sm:$0xff]  ;;  %s658_s26 = smov (!%p166_p10, %s362_s26), 15  ;;  %vm213_vm0 = vcmask 130048   ;;  %s483_s25 = scalar_lea.hbm %s482_s24, 32 }
  0x14   : > { %233 = vmatpush.bf16.msra.mxu0 %v397_v0  ;;  %422 = vmatpush.bf16.msra.mxu1 %v397_v0  ;;  %s363_s27 = sshll.u32 %s658_s26, 2  ;;  %v466_v7 = vld [vmem:[%s649_s2] ss:$0 sm:$0xff]  ;;  %p484_p11 = scmp.ne.s32.totalorder %s482_s24, %s483_s25 }
  0x15   : > { %423 = vmatpush.bf16.msra.mxu2 %v397_v0  ;;  %424 = vmatpush.bf16.msra.mxu3 %v397_v0  ;;  %s169_s30 = scalar_lea.vmem %s647_s0, %s363_s27  ;;  %s487_s28 = scalar_lea.hbm %s650_s3, 64 }
  0x16   : > { %v393_v1 = vld [vmem:[%s169_s30] sm:$0xff]  ;;  %v394_v2 = vld [vmem:[%s169_s30 + $0x8] sm:$0xff]  ;;  %v395_v3 = vld [vmem:[%s169_s30 + $0x10] sm:$0xff]  ;;  %p485_p12 = pnand %p484_p11, %p591_p5  ;;  %p488_p0 = scmp.lt.s32.totalorder %s482_s24, %s650_s3 }
  0x17   : > { %v396_v4 = vld [vmem:[%s169_s30 + $0x18] sm:$0xff]  ;;  %384 = vmatmul.msk.bf16.vlgmr.msra.gmra.mxu0 %vm213_vm0, %v393_v1  ;;  %385 = vmatmul.msk.bf16.vlgmr.msra.gmra.mxu1 %vm213_vm0, %v394_v2  ;;  %p489_p1 = scmp.lt.s32.totalorder %s487_s28, %s483_s25 }
  0x18   : > { %386 = vmatmul.msk.bf16.vlgmr.msra.gmra.mxu2 %vm213_vm0, %v395_v3  ;;  %387 = vmatmul.msk.bf16.vlgmr.msra.gmra.mxu3 %vm213_vm0, %v396_v4  ;;  %p486_p13 = pneg %p485_p12 }
  0x19   : > { %p490_p2 = por %p489_p1, %p488_p0 }
  0x1b   : > { %p491_p3 = pnand %p490_p2, %p486_p13 }
  0x94   : > { %v235_v5 = vpop.f32.mrf.mxu0  ;;  %v240_v6 = vpop.f32.mrf.mxu1 }
  0x95   : > { %v236_v8 = vadd.f32 %v466_v7, %v235_v5  ;;  %v241_v9 = vadd.f32 %v466_v7, %v240_v6 }
  0x97   : > { %v255_v16 = vmax.f32 %v236_v8, 0.0  ;;  %v257_v17 = vmax.f32 %v241_v9, 0.0 }
  0x9b   : > { %v245_v10 = vpop.f32.mrf.mxu2  ;;  %v250_v11 = vpop.f32.mrf.mxu3 }
  0x9c   : > { %v237_v12 = vpop.f32.mrf.mxu0  ;;  %v242_v13 = vpop.f32.mrf.mxu1  ;;  %v246_v22 = vadd.f32 %v466_v7, %v245_v10  ;;  %v251_v23 = vadd.f32 %v466_v7, %v250_v11 }
  0x9d   : > { %v238_v14 = vadd.f32 %v466_v7, %v237_v12  ;;  %v243_v15 = vadd.f32 %v466_v7, %v242_v13 }
  0x9e   : > { %v259_v28 = vmax.f32 %v246_v22, 0.0  ;;  %v261_v29 = vmax.f32 %v251_v23, 0.0 }
  0x9f   : > { %v256_v18 = vmax.f32 %v238_v14, 0.0  ;;  %v258_v19 = vmax.f32 %v243_v15, 0.0 }
  0xa1   : > { %v402_v20 = vpack.c.bf16 %v256_v18, %v255_v16  ;;  %v407_v21 = vpack.c.bf16 %v258_v19, %v257_v17 }
  0xa3   : > { %403 = vst [vmem:[%s164_s17] sm:$0xff] %v402_v20   ;;  %v247_v24 = vpop.f32.mrf.mxu2  ;;  %v252_v25 = vpop.f32.mrf.mxu3 }
  0xa4   : > { %419 = vst [vmem:[%s164_s17 + $0x8] sm:$0xff] %v407_v21   ;;  %v248_v26 = vadd.f32 %v466_v7, %v247_v24  ;;  %v253_v27 = vadd.f32 %v466_v7, %v252_v25 }
  0xa6   : > { %v260_v30 = vmax.f32 %v248_v26, 0.0  ;;  %v262_v31 = vmax.f32 %v253_v27, 0.0 }
  0xa8   : > { %v412_v32 = vpack.c.bf16 %v260_v30, %v259_v28  ;;  %v417_v33 = vpack.c.bf16 %v262_v31, %v261_v29 }
  0xaa   : > { %420 = vst [vmem:[%s164_s17 + $0x10] sm:$0xff] %v412_v32  }
  0xab   : > { %421 = vst [vmem:[%s164_s17 + $0x18] sm:$0xff] %v417_v33  }
  0xac   : > { %494 = shalt.err (!%p491_p3)
}
  0xad   : > { %s531_s4 = smov 64   ;;  %s532_s5 = smov 4  }
  0xae   : > { %425 = dma.vmem_to_hbm [thread:$0]  (%p591_p5), %s293_s19, 512, %s295_s20, %s280_s16, %s531_s4, %s531_s4, %s532_s5  }
  0xaf PF: > { %p431_p4 = scmp.ge.s32.totalorder %s529_s15, 2  ;;  %s309_s6 = sand.u32 1, %s517_s12  }
  0xb0   : > { %s310_s7 = scalar_lea.sflag [#allocation3], %s309_s6 }
  0xb1   : > { %p428_p7 = pnand %p431_p4, %p595_p6 }
  0xb3   : > { %p429_p8 = pneg %p428_p7 }
  0xb5   : > { %512 = dma.done.wait (%p429_p8), %s310_s7, 512  }
  0xb6   : > { %514 = vsyncadd (%p429_p8), %s310_s7, 4294966784  ;;  %p13_p9 = scmp.ge.s32.totalorder %s578_s18, 4   ;;  %s653_s12 = smov %s521_s13 }
  0xb7   : > { %s654_s13 = smov %s525_s14  ;;  %s655_s14 = smov %s589_s21 }
  0xb8   : > { %s656_s15 = smov %s578_s18  ;;  %15 = sbr.rel (!%p13_p9) target bundleno = 3 (0x3), region = 67 }
  0xbd   :  { %316 = vsyncpa [#allocation3], 1 }
  0xbe   :  { %318 = vsyncpa [#allocation3 + $0x1], 1 }

</bundles_post_ra>
